<compile_context>
chip_gen: v5e
topology: v5e:2x2
jax: 0.10.0
libtpu: 0.0.40
codegen_flags: <defaults>
</compile_context>

<pallas_src>
import functools

import jax
import jax.numpy as jnp
from jax.experimental import pallas as pl
from jax.experimental.pallas import tpu as pltpu


def _sublane_multiple(itemsize):
    # Sublane tiling of packed dtypes: f32 -> 8, bf16 -> 16, int8/fp8 -> 32.
    return 8 * max(1, 4 // itemsize)


def _trim_channel_window(C, lo, hi, itemsize):
    """Smallest aligned channel window [start, start + blk) covering [lo, hi).

    blk is a multiple of the sublane tile, start is a multiple of blk and the
    window stays inside [0, C].  Falls back to the full channel range (0, C).
    """
    step = _sublane_multiple(itemsize)
    blk = step
    while blk < C:
        start = (lo // blk) * blk
        if start + blk >= hi and start + blk <= C:
            return start, blk
        blk += step
    return 0, C


def _choose_tiling(N, HW, c_blk, out_c, itemsize, budget=8 << 20):
    """Pick (batch items per step, spatial tile) under a VMEM budget."""
    per_lane = 2 * (c_blk + out_c) * itemsize        # double-buffered in + out
    max_lanes = max(128, budget // per_lane)
    if HW > max_lanes:
        # Tile the flattened spatial axis; keep it a multiple of 128
        # (lane-dense, unmasked stores).  One batch item per step.
        return 1, max(128, (max_lanes // 128) * 128)
    # Whole spatial extent fits in one tile (a full-dim block is always legal).
    # Pack batch items per step to reach >= ~4k lane columns and amortise the
    # per-step overhead.  Partial last batch block is handled by Pallas.
    nb = min(N,
             max(1, max_lanes // max(HW, 1)),
             max(1, -(-4096 // max(HW, 1))))
    return nb, HW


def _make_kernel(n_inv, inv_off, acc_off, c_blk, accumulator):
    """Build the kernel body for a fixed static config.

    Refs are 3D: x_ref (nb, c_blk, tile), o_ref (nb, out_c, tile).
    Channel offsets are relative to the DMA'd channel window.
    """
    a0, a1 = acc_off

    def _reduce(x_ref):
        # Skip the sublane-offset slice when the window is exactly the block.
        slab = x_ref[...] if (a0 == 0 and a1 == c_blk) else x_ref[:, a0:a1, :]
        if accumulator == "mean":
            # Accumulate in f32 regardless of input dtype, cast on store.
            return jnp.mean(slab.astype(jnp.float32), axis=1, keepdims=True)
        if accumulator == "min":
            return jnp.min(slab, axis=1, keepdims=True)
        return jnp.max(slab, axis=1, keepdims=True)

    if n_inv is None:
        def kernel(x_ref, o_ref):
            o_ref[...] = _reduce(x_ref).astype(o_ref.dtype)
        return kernel

    j0, j1 = inv_off

    def kernel(x_ref, o_ref):
        # Invariant-channel passthrough + reduced channel, fused over the same
        # lane-dense tile (one HBM read, one HBM write per element).
        o_ref[:, 0:n_inv, :] = x_ref[:, j0:j1, :]
        o_ref[:, n_inv:, :] = _reduce(x_ref).astype(o_ref.dtype)

    return kernel


@functools.partial(jax.jit, static_argnames=("invariant_channels",
                                             "accumulate_channels",
                                             "accumulator"))
def accumulate_channels(x, *, invariant_channels, accumulate_channels,
                        accumulator):
    """Pallas equivalent of AccumulateChannels.forward.

    x: (N, C, H, W). Returns:
      (N, 1, H, W)              if invariant_channels is None
      (N, (i1 - i0) + 1, H, W)  otherwise
    """
    assert accumulator in ("mean", "min", "max")
    N, C, H, W = x.shape
    c0, c1 = accumulate_channels
    assert 0 <= c0 < c1 <= C, "invalid accumulate_channels"

    if invariant_channels is None:
        i0 = i1 = None
        out_c = 1
        lo, hi = c0, c1
    else:
        i0, i1 = invariant_channels
        assert 0 <= i0 < i1 <= C, "invalid invariant_channels"
        out_c = (i1 - i0) + 1
        lo, hi = min(i0, c0), max(i1, c1)

    itemsize = jnp.dtype(x.dtype).itemsize
    # Trim the DMA'd channel window to an aligned block covering the union of
    # the referenced channel ranges (unused channels never leave HBM).
    c_start, c_blk = _trim_channel_window(C, lo, hi, itemsize)
    c_index = c_start // c_blk  # block index along the channel axis

    HW = H * W
    nb, tile = _choose_tiling(N, HW, c_blk, out_c, itemsize)

    n_inv = None if invariant_channels is None else (i1 - i0)
    inv_off = None if invariant_channels is None else (i0 - c_start,
                                                       i1 - c_start)
    acc_off = (c0 - c_start, c1 - c_start)
    kernel = _make_kernel(n_inv, inv_off, acc_off, c_blk, accumulator)

    # Flatten spatial dims -> lane-dense last axis (free for contiguous NCHW).
    x_flat = x.reshape(N, C, HW)

    out_flat = pl.pallas_call(
        kernel,
        out_shape=jax.ShapeDtypeStruct((N, out_c, HW), x.dtype),
        grid_spec=pltpu.PrefetchScalarGridSpec(
            num_scalar_prefetch=0,
            grid=(pl.cdiv(N, nb), pl.cdiv(HW, tile)),
            in_specs=[pl.BlockSpec((nb, c_blk, tile),
                                   lambda n, s: (n, c_index, s))],
            out_specs=pl.BlockSpec((nb, out_c, tile),
                                   lambda n, s: (n, 0, s)),
        ),
        compiler_params=pltpu.CompilerParams(
            dimension_semantics=("parallel", "parallel")),
    )(x_flat)

    return out_flat.reshape(N, out_c, H, W)


def _reference(x, invariant_channels, accumulate_channels, accumulator):
    """Pure-JAX reference matching the PyTorch semantics."""
    c0, c1 = accumulate_channels
    if accumulator == "mean":
        acc = jnp.mean(x[:, c0:c1].astype(jnp.float32), axis=1,
                       keepdims=True).astype(x.dtype)
    else:
        red = {"min": jnp.min, "max": jnp.max}[accumulator]
        acc = red(x[:, c0:c1], axis=1, keepdims=True)
    if invariant_channels is None:
        return acc
    i0, i1 = invariant_channels
    return jnp.concatenate([x[:, i0:i1], acc], axis=1)


if __name__ == "__main__":
    key = jax.random.PRNGKey(0)
    k1, k2 = jax.random.split(key)
    x6 = jax.random.normal(k1, (2, 6, 16, 16), dtype=jnp.float32)
    x16 = jax.random.normal(k2, (2, 16, 16, 16), dtype=jnp.float32)
    x16b = x16.astype(jnp.bfloat16)

    configs = [
        # (input, invariant_channels, accumulate_channels, accumulator)
        (x6, (0, 2), (2, 6), "mean"),     # full-C window (C < 8)
        (x6, (0, 2), (2, 6), "min"),
        (x6, (0, 2), (2, 6), "max"),
        (x6, None, (1, 5), "mean"),       # full-C window, interior slice
        (x16, None, (0, 8), "mean"),      # trimmed window [0, 8), whole block
        (x16, None, (8, 16), "max"),      # trimmed window [8, 16), block 1
        (x16, None, (2, 6), "mean"),      # trimmed window [0, 8), slice [2, 6)
        (x16, (1, 3), (4, 8), "max"),     # trimmed window [0, 8), inv + acc
        (x16, (0, 8), (8, 16), "mean"),   # union == C -> full-C window
        (x16b, None, (0, 16), "mean"),    # bf16: f32 accumulation path
    ]

    ok = True
    for xin, inv, acc_ch, acc_op in configs:
        out = accumulate_channels(
            xin,
            invariant_channels=inv,
            accumulate_channels=acc_ch,
            accumulator=acc_op,
        )
        out = jax.block_until_ready(out)
        ref = _reference(xin, inv, acc_ch, acc_op)
        tol = 2e-2 if xin.dtype == jnp.bfloat16 else 1e-6
        same = (out.shape == ref.shape and
                jnp.allclose(out.astype(jnp.float32), ref.astype(jnp.float32),
                             atol=tol, rtol=tol))
        if not same:
            ok = False
            print(f"MISMATCH for config inv={inv} acc={acc_ch} op={acc_op} "
                  f"dtype={xin.dtype}")

    if ok:
        print("KERNEL_OK")
</pallas_src>

<mosaic_0001>
module attributes {stable_mosaic.version = 11 : i64} {
  func.func @kernel(%arg0: i32, %arg1: i32, %arg2: memref<2x6x256xf32, #tpu.memory_space<vmem>>, %arg3: memref<2x3x256xf32, #tpu.memory_space<vmem>>) attributes {dimension_semantics = [#tpu.dimension_semantics<parallel>, #tpu.dimension_semantics<parallel>], iteration_bounds = array<i64: 1, 1>, scalar_prefetch = 0 : i64, scratch_operands = 0 : i64, tpu.core_type = #tpu.core_type<tc>, window_params = [{transform_indices = @transform_0, window_bounds = array<i64: 2, 6, 256>}, {transform_indices = @transform_1, window_bounds = array<i64: 2, 3, 256>}]} {
    %c0 = arith.constant 0 : index
    %c0_0 = arith.constant 0 : index
    %c0_1 = arith.constant 0 : index
    %0 = vector.load %arg2[%c0, %c0_0, %c0_1] : memref<2x6x256xf32, #tpu.memory_space<vmem>>, vector<2x2x256xf32>
    %c0_2 = arith.constant 0 : index
    %c0_3 = arith.constant 0 : index
    %c0_4 = arith.constant 0 : index
    %1 = vector.load %arg3[%c0_2, %c0_3, %c0_4] : memref<2x3x256xf32, #tpu.memory_space<vmem>>, vector<2x2x256xf32>
    tpu.vector_store %arg3[%c0_2, %c0_3, %c0_4], %0 {strides = array<i32>} : memref<2x3x256xf32, #tpu.memory_space<vmem>>, vector<2x2x256xf32>,
    %c0_5 = arith.constant 0 : index
    %c2 = arith.constant 2 : index
    %c0_6 = arith.constant 0 : index
    %2 = vector.load %arg2[%c0_5, %c2, %c0_6] : memref<2x6x256xf32, #tpu.memory_space<vmem>>, vector<2x4x256xf32>
    %cst = arith.constant dense<0.000000e+00> : vector<2x256xf32>
    %3 = vector.multi_reduction <add>, %2, %cst [1] : vector<2x4x256xf32> to vector<2x256xf32>
    %4 = vector.shape_cast %3 : vector<2x256xf32> to vector<2x1x256xf32>
    %cst_7 = arith.constant 4.000000e+00 : f32
    %5 = vector.broadcast %cst_7 : f32 to vector<2x1x256xf32>
    %6 = arith.divf %4, %5 : vector<2x1x256xf32>
    %c0_8 = arith.constant 0 : index
    %c2_9 = arith.constant 2 : index
    %c0_10 = arith.constant 0 : index
    %7 = vector.load %arg3[%c0_8, %c2_9, %c0_10] : memref<2x3x256xf32, #tpu.memory_space<vmem>>, vector<2x1x256xf32>
    tpu.vector_store %arg3[%c0_8, %c2_9, %c0_10], %6 {strides = array<i32>} : memref<2x3x256xf32, #tpu.memory_space<vmem>>, vector<2x1x256xf32>,
    return
  }
  func.func @transform_0(%arg0: i32, %arg1: i32) -> (i32, i32, i32) {
    %c0_i32 = arith.constant 0 : i32
    %c0_i32_0 = arith.constant 0 : i32
    return %arg0, %c0_i32, %arg1 : i32, i32, i32
  }
  func.func @transform_1(%arg0: i32, %arg1: i32) -> (i32, i32, i32) {
    %c0_i32 = arith.constant 0 : i32
    %c0_i32_0 = arith.constant 0 : i32
    return %arg0, %c0_i32, %arg1 : i32, i32, i32
  }
}

</mosaic_0001>

<bundles_post_ra>
// kernel: accumulate_channels.1
= control target key start
LH: loop header
LB: loop body
LE: loop exit
PB: predicated region body
PF: predicated region fallthrough
CT: control target
= control target key end

     0   :  { %v108_v3 = vmov 4.0   ;;  %vm18_vm0 = vcmask 1043456   ;;  %v91_v49 = vlaneseq  ;;  %vm86_vm2 = vcmask 1040384   ;;  %s161_s0 = inlined_call_operand.vmem [shape: f32[2,6,256], index: 0, kind: input, shape index: {}]   ;;  %s162_s1 = inlined_call_operand.vmem [shape: f32[2,3,256], index: 1, kind: output, shape index: {}]  }
   0x1   :  { %v8_v0 = vld [vmem:[%s161_s0] sm:$0x3]  ;;  %v9_v1 = vld [vmem:[%s161_s0 + $0x8] sm:$0x3]  ;;  %v10_v2 = vld [vmem:[%s161_s0 + $0x10] sm:$0x3]  ;;  %106 = vrcp.f32 %v108_v3 }
   0x2   :  { %v16_v4 = vrot.slane %v9_v1, 4  ;;  %v11_v5 = vld [vmem:[%s161_s0 + $0x18] sm:$0x3]  ;;  %v25_v6 = vld [vmem:[%s161_s0] sm:$0x3c]  ;;  %vm93_vm3 = vcmp.lt.s32.totalorder %v91_v49, 256 }
   0x3   :  { %v17_v7 = vrot.slane %v11_v5, 4  ;;  %v26_v8 = vld [vmem:[%s161_s0 + $0x8] sm:$0x3c]  ;;  %v33_v9 = vrot.slane %v25_v6, 2  ;;  %v27_v10 = vld [vmem:[%s161_s0 + $0x10] sm:$0x3c] }
   0x4   :  { %v19_v11 = vsel %vm18_vm0, %v8_v0, %v16_v4  ;;  %v34_v12 = vrot.slane %v26_v8, 2  ;;  %v28_v13 = vld [vmem:[%s161_s0 + $0x18] sm:$0x3c]  ;;  %v35_v14 = vrot.slane %v27_v10, 2 }
   0x5   :  { %23 = vst [vmem:[%s162_s1] sm:$0x33] %v19_v11  ;;  %v20_v15 = vsel %vm18_vm0, %v10_v2, %v17_v7  ;;  %v41_v16 = vsel %vm18_vm0, %v33_v9, 0.0  ;;  %v36_v17 = vrot.slane %v28_v13, 2 }
   0x6   :  { %24 = vst [vmem:[%s162_s1 + $0x8] sm:$0x33] %v20_v15  ;;  %v42_v18 = vrot.slane %v41_v16, 4  ;;  %v48_v19 = vsel %vm18_vm0, %v34_v12, 0.0  ;;  %v55_v20 = vsel %vm18_vm0, %v35_v14, 0.0 }
   0x7   :  { %v107_v21 = vpop.eup %106  ;;  %v49_v22 = vrot.slane %v48_v19, 4  ;;  %v56_v23 = vrot.slane %v55_v20, 4  ;;  %v62_v24 = vsel %vm18_vm0, %v36_v17, 0.0 }
   0x8   :  { %v43_v25 = vadd.f32 %v42_v18, %v41_v16  ;;  %v70_v26 = vmul.f32 4.0, %v107_v21  ;;  %v63_v27 = vrot.slane %v62_v24, 4  ;;  %vm74_vm1 = vweird.f32 %v107_v21 }
   0x9   :  { %v50_v28 = vadd.f32 %v49_v22, %v48_v19  ;;  %v57_v29 = vadd.f32 %v56_v23, %v55_v20 }
   0xa   :  { %v44_v30 = vrot.slane %v43_v25, 2  ;;  %v71_v31 = vsub.f32 1.0, %v70_v26  ;;  %v64_v32 = vadd.f32 %v63_v27, %v62_v24 }
   0xb   :  { %v51_v33 = vrot.slane %v50_v28, 2  ;;  %v58_v34 = vrot.slane %v57_v29, 2 }
   0xc   :  { %v45_v35 = vadd.f32 %v44_v30, %v43_v25  ;;  %v72_v36 = vmul.f32 %v107_v21, %v71_v31  ;;  %v65_v37 = vrot.slane %v64_v32, 2 }
   0xd   :  { %v52_v38 = vadd.f32 %v51_v33, %v50_v28  ;;  %v59_v39 = vadd.f32 %v58_v34, %v57_v29 }
   0xe   :  { %v46_v40 = vrot.slane %v45_v35, 1  ;;  %v73_v41 = vadd.f32 %v107_v21, %v72_v36  ;;  %v66_v42 = vadd.f32 %v65_v37, %v64_v32 }
   0xf   :  { %v53_v43 = vrot.slane %v52_v38, 1  ;;  %v60_v44 = vrot.slane %v59_v39, 1 }
  0x10   :  { %v47_v45 = vadd.f32 %v46_v40, %v45_v35  ;;  %v75_v46 = vsel %vm74_vm1, %v107_v21, %v73_v41  ;;  %v67_v47 = vrot.slane %v66_v42, 1 }
  0x11   :  { %v54_v48 = vadd.f32 %v53_v43, %v52_v38  ;;  %v61_v50 = vadd.f32 %v60_v44, %v59_v39 }
  0x12   :  { %v68_v51 = vadd.f32 %v67_v47, %v66_v42  ;;  %v76_v52 = vmul.f32 %v75_v46, %v47_v45 }
  0x13   :  { %v77_v53 = vmul.f32 %v75_v46, %v54_v48  ;;  %v78_v54 = vmul.f32 %v75_v46, %v61_v50 }
  0x14   :  { %v79_v55 = vmul.f32 %v75_v46, %v68_v51 }
  0x15   :  { %v84_v56 = vrot.slane %v77_v53, 7 }
  0x16   :  { %v85_v57 = vrot.slane %v79_v55, 7 }
  0x17   :  { %v87_v58 = vsel %vm86_vm2, %v76_v52, %v84_v56 }
  0x18   :  { %103 = vst.msk [vmem:[%s162_s1 + $0x2] ss:$4 sm:$0x3] %vm93_vm3, %v87_v58  ;;  %v88_v59 = vsel %vm86_vm2, %v78_v54, %v85_v57 }
  0x19   :  { %104 = vst.msk [vmem:[%s162_s1 + $0xa] ss:$4 sm:$0x3] %vm93_vm3, %v88_v59 }

</bundles_post_ra>
